<compile_context>
chip_gen: v7x
topology: tpu7x:2x2x1
jax: 0.10.0
libtpu: 0.0.40
codegen_flags: <defaults>
</compile_context>

<pallas_src>
import functools
import math

import numpy as np
import jax
import jax.numpy as jnp
from jax import lax
from jax.experimental import pallas as pl
from jax.experimental.pallas import tpu as pltpu


# Wavelet decomposition filters built in-script (identical values to
# pywt.Wavelet('haar').dec_lo / dec_hi, which is what the PyTorch module uses).
# TODO(synk): other wavenames would require pywt at build time; only haar here.
_SQRT2_2 = math.sqrt(2.0) / 2.0
WAVELETS = {
    "haar": ([_SQRT2_2, _SQRT2_2], [-_SQRT2_2, _SQRT2_2]),
}

_PAD_MODE = {
    "constant": "constant",
    "reflect": "reflect",      # torch 'reflect'   == numpy 'reflect'
    "replicate": "edge",       # torch 'replicate' == numpy 'edge'
    "circular": "wrap",        # torch 'circular'  == numpy 'wrap'
}

_SEQ_BLOCK = 128        # input seq block (output block = 2*_SEQ_BLOCK lanes)
_MAX_ROW_BLOCK = 2048   # rows per grid step (multiple of 8); sweepable


def _cdiv(a, b):
    return -(-a // b)


def _round_up(a, b):
    return _cdiv(a, b) * b


def _build_synthesis_matrix(filt, T, pad_sizes, pad_type):
    """Dense (To, T) matrix A with A @ x == conv1d(pad(upsample2(x)), filt)."""
    filt = np.asarray(filt, dtype=np.float64)
    K = filt.shape[0]
    Tu = 2 * T
    pad_l, pad_r = pad_sizes
    Tp = Tu + pad_l + pad_r
    To = Tp - K + 1

    # Zero-insertion upsample: u[2i] = x[i].
    U = np.zeros((Tu, T), dtype=np.float64)
    U[2 * np.arange(T), np.arange(T)] = 1.0

    # Boundary extension (pad) as a selection matrix.
    P = np.zeros((Tp, Tu), dtype=np.float64)
    if pad_type == "constant":
        P[pad_l:pad_l + Tu, :] = np.eye(Tu)
    else:
        idx = np.pad(np.arange(Tu), (pad_l, pad_r), mode=_PAD_MODE[pad_type])
        P[np.arange(Tp), idx] = 1.0

    # Stride-1 valid cross-correlation (PyTorch conv1d semantics).
    Cm = np.zeros((To, Tp), dtype=np.float64)
    for p in range(K):
        Cm[np.arange(To), np.arange(To) + p] = filt[p]

    return Cm @ P @ U                      # (To, T)


def _build_plan(filt_low, filt_high, T, pad_sizes, pad_type):
    """Host-side plan: (Tk, alo, ahi, corr_lo, corr_hi).

    alo/ahi are float64 slabs of shape (Tk, To_b) with
      out_block = L_block @ alo + H_block @ ahi   (+ column-0 fixup on block 0).
    In the banded path Tk == _SEQ_BLOCK and the slabs are independent of T.
    """
    K = len(filt_low)
    pad_l, pad_r = pad_sizes
    To = 2 * T + pad_l + pad_r - K + 1

    def dense(t):
        return (_build_synthesis_matrix(filt_low, t, pad_sizes, pad_type),
                _build_synthesis_matrix(filt_high, t, pad_sizes, pad_type))

    Tb = _SEQ_BLOCK
    if T % Tb == 0 and T > Tb and To == 2 * T:
        # Derive slabs from a small 3-block representative problem (size does
        # not depend on T) and verify the assumed banded structure exactly.
        t_rep = 3 * Tb
        a_lo, a_hi = dense(t_rep)
        slabs, ok = [], True
        for a in (a_lo, a_hi):
            recon = np.zeros_like(a)
            subs = []
            for b in range(3):
                sub = a[2 * b * Tb:2 * (b + 1) * Tb, b * Tb:(b + 1) * Tb]
                subs.append(sub)
                recon[2 * b * Tb:2 * (b + 1) * Tb, b * Tb:(b + 1) * Tb] = sub
            diff0 = subs[0] - subs[1]
            off00 = diff0.copy()
            off00[0, 0] = 0.0
            if not (np.array_equal(recon, a)            # exactly block-diagonal
                    and np.array_equal(subs[1], subs[2])  # no right-edge effect
                    and not off00.any()):                 # left edge only at [0,0]
                ok = False
                break
            slabs.append((subs[1].T.copy(), float(diff0[0, 0])))
        if ok:
            (alo, c_lo), (ahi, c_hi) = slabs
            return Tb, alo, ahi, c_lo, c_hi
        # TODO(synk): wavelets longer than haar need halo'd input blocks for the
        # banded path; fall through to the dense single-block formulation.

    a_lo, a_hi = dense(T)
    return T, a_lo.T.copy(), a_hi.T.copy(), 0.0, 0.0


@functools.partial(jax.jit, static_argnames=("corr_lo", "corr_hi"))
def _idwt1d_pallas(L, H, alo, ahi, *, corr_lo, corr_hi):
    N, C, T = L.shape
    Tk, To_b = alo.shape
    assert T % Tk == 0
    n_seq = T // Tk
    To = To_b if n_seq == 1 else n_seq * To_b
    M = N * C
    Lf = L.reshape(M, T)
    Hf = H.reshape(M, T)

    # Row block: large enough to amortize the ~0.35us/step grid overhead, but
    # >=2 row blocks whenever the problem allows so the "parallel" axes can
    # shard across both v7x TensorCores (neutral on single-TC v5e/v6e).
    if M <= 8:
        Rb = M
    else:
        Rb = min(_MAX_ROW_BLOCK, _round_up(_cdiv(M, 2), 8))
    if n_seq == 1 and Tk > 512:
        # Dense fallback with a big resident slab: keep blocks small.
        # TODO(synk): pad T to a multiple of 128 instead for very long,
        # non-aligned sequences.
        Rb = min(Rb, 256)

    # f32 inputs: full-precision MXU passes (matches a float32 reference conv);
    # bf16 inputs run at native MXU rate.  f32 accumulation either way.
    precision = (lax.Precision.HIGHEST if L.dtype == jnp.float32
                 else lax.Precision.DEFAULT)
    apply_corr = (corr_lo != 0.0) or (corr_hi != 0.0)  # only 'replicate' pad

    def kernel(l_ref, h_ref, alo_ref, ahi_ref, o_ref):
        acc = jnp.dot(l_ref[...], alo_ref[...], precision=precision,
                      preferred_element_type=jnp.float32)
        acc = acc + jnp.dot(h_ref[...], ahi_ref[...], precision=precision,
                            preferred_element_type=jnp.float32)
        if apply_corr:  # static python branch; compiled out when not needed
            first = (lax.broadcasted_iota(jnp.int32, acc.shape, 1) == 0) & (
                pl.program_id(1) == 0)
            corr = (corr_lo * l_ref[:, 0:1].astype(jnp.float32)
                    + corr_hi * h_ref[:, 0:1].astype(jnp.float32))
            acc = acc + jnp.where(first, corr, 0.0)
        o_ref[...] = acc.astype(o_ref.dtype)

    # Explicit VMEM budget: double-buffered L/H/out blocks + resident slabs
    # (v5e's scoped default is only 16 MiB; v7x physical VMEM is 64 MiB).
    esize = Lf.dtype.itemsize
    est = (2 * (2 * Rb * Tk * esize)        # L + H blocks, double-buffered
           + 2 * (Rb * To_b * esize)        # output block, double-buffered
           + 2 * (2 * Tk * To_b * esize))   # resident slabs (+ margin)
    vmem_limit = int(min(128 * 1024 * 1024, max(16 * 1024 * 1024, 2 * est)))

    out = pl.pallas_call(
        kernel,
        out_shape=jax.ShapeDtypeStruct((M, To), L.dtype),
        grid_spec=pltpu.PrefetchScalarGridSpec(
            num_scalar_prefetch=0,
            grid=(_cdiv(M, Rb), n_seq),
            in_specs=[
                pl.BlockSpec((Rb, Tk), lambda i, j: (i, j)),
                pl.BlockSpec((Rb, Tk), lambda i, j: (i, j)),
                pl.BlockSpec((Tk, To_b), lambda i, j: (0, 0)),  # grid-invariant
                pl.BlockSpec((Tk, To_b), lambda i, j: (0, 0)),  # grid-invariant
            ],
            out_specs=pl.BlockSpec((Rb, To_b), lambda i, j: (i, j)),
        ),
        compiler_params=pltpu.CompilerParams(
            dimension_semantics=("parallel", "parallel"),
            vmem_limit_bytes=vmem_limit),
    )(Lf, Hf, alo, ahi)
    # TODO(synk): for deployments with tiny T (To < 128 lanes) a transposed
    # layout (rows on lanes) or a pure-VPU 2-tap stencil with an interleaved
    # store would avoid masked partial stores; not needed at these block sizes.
    return out.reshape(N, C, To)


class IDWT1DPallas:
    """Pallas port of IDWT_1D.forward (non-trainable, depthwise default)."""

    def __init__(self, pad_type="reflect", wavename="haar", stride=2,
                 in_channels=1, out_channels=None, groups=None,
                 kernel_size=None, trainable=False):
        assert stride == 2
        assert pad_type in _PAD_MODE
        assert not trainable and kernel_size is None
        self.pad_type = pad_type
        self.in_channels = in_channels
        self.out_channels = in_channels if out_channels is None else out_channels
        self.groups = in_channels if groups is None else groups
        assert isinstance(self.groups, int) and self.in_channels % self.groups == 0
        # TODO(synk): only the default depthwise config (groups == in_channels
        # == out_channels, as in the reference usage) is implemented here.
        assert self.groups == self.in_channels == self.out_channels

        dec_lo, dec_hi = WAVELETS[wavename]
        self.filt_low = np.asarray(dec_lo, dtype=np.float64)
        self.filt_high = np.asarray(dec_hi, dtype=np.float64)
        self.kernel_size = self.filt_low.shape[0]
        K = self.kernel_size
        if K % 2 == 0:
            self.pad_sizes = (K // 2 - 0, K // 2 - 1)
        else:
            self.pad_sizes = (K // 2 - 1, K // 2 + 1)

        self._plan_cache = {}   # T -> (Tk, alo_np, ahi_np, corr_lo, corr_hi)
        self._dev_cache = {}    # (T, dtype) -> (alo_dev, ahi_dev, corr_lo, corr_hi)

    def _slabs(self, T, dtype):
        key = (T, np.dtype(dtype).name)
        hit = self._dev_cache.get(key)
        if hit is not None:
            return hit
        if T not in self._plan_cache:
            self._plan_cache[T] = _build_plan(self.filt_low, self.filt_high, T,
                                              self.pad_sizes, self.pad_type)
        _, alo, ahi, c_lo, c_hi = self._plan_cache[T]
        dev = (jnp.asarray(alo, dtype=dtype), jnp.asarray(ahi, dtype=dtype),
               c_lo, c_hi)
        self._dev_cache[key] = dev
        return dev

    def __call__(self, L, H):
        assert L.ndim == H.ndim == 3
        assert L.shape == H.shape
        assert L.shape[1] == self.in_channels
        alo, ahi, c_lo, c_hi = self._slabs(L.shape[-1], L.dtype)
        return _idwt1d_pallas(L, H, alo, ahi, corr_lo=c_lo, corr_hi=c_hi)


def _reference(L, H, mod: IDWT1DPallas):
    """Pure-JAX reference mirroring the PyTorch ops (upsample + pad + conv1d)."""
    N, C, T = L.shape
    pad_l, pad_r = mod.pad_sizes
    mode = _PAD_MODE[mod.pad_type]

    def upsample(x):
        u = jnp.zeros((N, C, 2 * T), dtype=x.dtype)
        return u.at[:, :, 0::2].set(x)

    def pad(x):
        if mode == "constant":
            return jnp.pad(x, ((0, 0), (0, 0), (pad_l, pad_r)))
        return jnp.pad(x, ((0, 0), (0, 0), (pad_l, pad_r)), mode=mode)

    def conv(x, filt):
        w = jnp.broadcast_to(
            jnp.asarray(filt, dtype=x.dtype)[None, None, :],
            (C, 1, len(filt)))
        return lax.conv_general_dilated(
            x, w, window_strides=(1,), padding="VALID",
            dimension_numbers=("NCH", "OIH", "NCH"),
            feature_group_count=C, precision=lax.Precision.HIGHEST)

    return (conv(pad(upsample(L)), mod.filt_low)
            + conv(pad(upsample(H)), mod.filt_high))


if __name__ == "__main__":
    key = jax.random.PRNGKey(0)

    # Case 1: tiny shape, single-block path.  Case 2: banded path (T multiple
    # of 128, two seq blocks) with the 'replicate' column-0 correction.
    cases = [("reflect", 2, 4, 8), ("replicate", 2, 4, 256)]
    for idx, (pad_type, N, C, T) in enumerate(cases):
        k_l, k_h = jax.random.split(jax.random.fold_in(key, idx))
        L = jax.random.normal(k_l, (N, C, T), dtype=jnp.float32)
        H = jax.random.normal(k_h, (N, C, T), dtype=jnp.float32)

        idwt = IDWT1DPallas(pad_type=pad_type, wavename="haar", stride=2,
                            in_channels=C)
        y = jax.block_until_ready(idwt(L, H))
        y_ref = jax.block_until_ready(_reference(L, H, idwt))

        assert y.shape == y_ref.shape == (N, C, 2 * T), (pad_type, y.shape)
        err = float(jnp.max(jnp.abs(y - y_ref)))
        assert err < 1e-5, (pad_type, T, err)

    print("KERNEL_OK")
</pallas_src>

<mosaic_0001>
module attributes {stable_mosaic.version = 11 : i64} {
  func.func @kernel(%arg0: i32, %arg1: i32, %arg2: memref<8x8xf32, #tpu.memory_space<vmem>>, %arg3: memref<8x8xf32, #tpu.memory_space<vmem>>, %arg4: memref<8x16xf32, #tpu.memory_space<vmem>>, %arg5: memref<8x16xf32, #tpu.memory_space<vmem>>, %arg6: memref<8x16xf32, #tpu.memory_space<vmem>>) attributes {dimension_semantics = [#tpu.dimension_semantics<parallel>, #tpu.dimension_semantics<parallel>], iteration_bounds = array<i64: 1, 1>, scalar_prefetch = 0 : i64, scratch_operands = 0 : i64, tpu.core_type = #tpu.core_type<tc>, window_params = [{transform_indices = @transform_0, window_bounds = array<i64: 8, 8>}, {transform_indices = @transform_1, window_bounds = array<i64: 8, 8>}, {pipeline_mode = #tpu.pipeline_mode<synchronous>, transform_indices = @transform_2, window_bounds = array<i64: 8, 16>}, {pipeline_mode = #tpu.pipeline_mode<synchronous>, transform_indices = @transform_3, window_bounds = array<i64: 8, 16>}, {transform_indices = @transform_4, window_bounds = array<i64: 8, 16>}]} {
    %c0 = arith.constant 0 : index
    %c0_0 = arith.constant 0 : index
    %0 = vector.load %arg2[%c0, %c0_0] : memref<8x8xf32, #tpu.memory_space<vmem>>, vector<8x8xf32>
    %c0_1 = arith.constant 0 : index
    %c0_2 = arith.constant 0 : index
    %1 = vector.load %arg4[%c0_1, %c0_2] : memref<8x16xf32, #tpu.memory_space<vmem>>, vector<8x16xf32>
    %cst = arith.constant dense<0.000000e+00> : vector<8x16xf32>
    %2 = tpu.matmul %0, %1, %cst {dimension_numbers = #tpu.dot_dimension_numbers<[1], [0], [0], [1], [0, 0, 1, 1], [], []>, precision = #tpu.contract_precision<fp32>} : vector<8x8xf32>, vector<8x16xf32>, vector<8x16xf32> -> vector<8x16xf32>
    %c0_3 = arith.constant 0 : index
    %c0_4 = arith.constant 0 : index
    %3 = vector.load %arg3[%c0_3, %c0_4] : memref<8x8xf32, #tpu.memory_space<vmem>>, vector<8x8xf32>
    %c0_5 = arith.constant 0 : index
    %c0_6 = arith.constant 0 : index
    %4 = vector.load %arg5[%c0_5, %c0_6] : memref<8x16xf32, #tpu.memory_space<vmem>>, vector<8x16xf32>
    %cst_7 = arith.constant dense<0.000000e+00> : vector<8x16xf32>
    %5 = tpu.matmul %3, %4, %cst_7 {dimension_numbers = #tpu.dot_dimension_numbers<[1], [0], [0], [1], [0, 0, 1, 1], [], []>, precision = #tpu.contract_precision<fp32>} : vector<8x8xf32>, vector<8x16xf32>, vector<8x16xf32> -> vector<8x16xf32>
    %6 = arith.addf %2, %5 : vector<8x16xf32>
    %c0_8 = arith.constant 0 : index
    %c0_9 = arith.constant 0 : index
    %7 = vector.load %arg6[%c0_8, %c0_9] : memref<8x16xf32, #tpu.memory_space<vmem>>, vector<8x16xf32>
    tpu.vector_store %arg6[%c0_8, %c0_9], %6 {strides = array<i32>} : memref<8x16xf32, #tpu.memory_space<vmem>>, vector<8x16xf32>,
    return
  }
  func.func @transform_0(%arg0: i32, %arg1: i32) -> (i32, i32) {
    %c0_i32 = arith.constant 0 : i32
    return %arg0, %arg1 : i32, i32
  }
  func.func @transform_1(%arg0: i32, %arg1: i32) -> (i32, i32) {
    %c0_i32 = arith.constant 0 : i32
    return %arg0, %arg1 : i32, i32
  }
  func.func @transform_2(%arg0: i32, %arg1: i32) -> (i32, i32) {
    %c0_i32 = arith.constant 0 : i32
    %c0_i32_0 = arith.constant 0 : i32
    %c0_i32_1 = arith.constant 0 : i32
    return %c0_i32, %c0_i32_0 : i32, i32
  }
  func.func @transform_3(%arg0: i32, %arg1: i32) -> (i32, i32) {
    %c0_i32 = arith.constant 0 : i32
    %c0_i32_0 = arith.constant 0 : i32
    %c0_i32_1 = arith.constant 0 : i32
    return %c0_i32, %c0_i32_0 : i32, i32
  }
  func.func @transform_4(%arg0: i32, %arg1: i32) -> (i32, i32) {
    %c0_i32 = arith.constant 0 : i32
    return %arg0, %arg1 : i32, i32
  }
}

</mosaic_0001>

<bundles_post_ra>
// kernel: _idwt1d_pallas.1
= control target key start
LH: loop header
LB: loop body
LE: loop exit
PB: predicated region body
PF: predicated region fallthrough
CT: control target
= control target key end

     0   :  { %9 = vsyncpa [#allocation3], 0  ;;  %s1253_s0 = inlined_call_operand.hbm [shape: f32[8,8], index: 0, kind: input, shape index: {}]   ;;  %s1254_s1 = inlined_call_operand.vmem [shape: f32[8,8], index: 1, kind: input, shape index: {}]   ;;  %s1255_s2 = inlined_call_operand.hbm [shape: f32[8,16], index: 2, kind: input, shape index: {}]   ;;  %s1256_s3 = inlined_call_operand.vmem [shape: f32[8,16], index: 3, kind: input, shape index: {}]   ;;  %s1257_s4 = inlined_call_operand.hbm [shape: f32[8,16], index: 4, kind: output, shape index: {}]  }
   0x1   :  { %10 = vsyncpa [#allocation6], 0 }
   0x2   :  { %11 = vsyncpa [#allocation4], 0  ;;  %s1145_s15 = smov [#allocation2]   ;;  %s1146_s17 = smov [#allocation5]  }
   0x3   :  { %s18_s16 = sshll.u32 %s1145_s15, 4  ;;  %s30_s18 = sshll.u32 %s1146_s17, 4  ;;  %s19_s16 = int_to_ptr.vmem [resolvable:$true] %s18_s16  ;;  %s31_s18 = int_to_ptr.vmem [resolvable:$true] %s30_s18 }
   0x4   :  { %s1073_s21 = scalar_lea.hbm %s1253_s0, 128 }
   0x5   :  { %p1074_p0 = scmp.ne.s32.totalorder %s1253_s0, %s1073_s21  ;;  %p1077_p1 = scmp.lt.u32.totalorder %s1073_s21, %s1253_s0 }
   0x7   :  { %p1079_p2 = pnand %p1077_p1, %p1074_p0 }
   0x9   :  { %1082 = shalt.err (!%p1079_p2)
}
   0xa   :  { %s1083_s26 = scalar_lea.vmem %s19_s16, 128  ;;  %p1088_p4 = scmp.lt.s32.totalorder %s19_s16, %s19_s16 }
   0xb   :  { %p1084_p3 = scmp.ne.s32.totalorder %s19_s16, %s1083_s26  ;;  %p1089_p5 = scmp.lt.s32.totalorder %s1083_s26, %s1083_s26 }
   0xd   :  { %p1090_p6 = por %p1089_p5, %p1088_p4 }
   0xf   :  { %p1091_p7 = pnand %p1090_p6, %p1084_p3 }
  0x11   :  { %1094 = shalt.err (!%p1091_p7)
}
  0x12   :  { %21 = dma.hbm_to_vmem [thread:$0]  %s1253_s0, 128, %s19_s16, [#allocation3]  }
  0x13   :  { %s1095_s5 = scalar_lea.hbm %s1255_s2, 128 }
  0x14   :  { %p1096_p8 = scmp.ne.s32.totalorder %s1255_s2, %s1095_s5  ;;  %p1099_p9 = scmp.lt.u32.totalorder %s1095_s5, %s1255_s2 }
  0x16   :  { %p1101_p10 = pnand %p1099_p9, %p1096_p8 }
  0x18   :  { %1104 = shalt.err (!%p1101_p10)
}
  0x19   :  { %s1105_s10 = scalar_lea.vmem %s31_s18, 128  ;;  %p1110_p12 = scmp.lt.s32.totalorder %s31_s18, %s31_s18 }
  0x1a   :  { %p1106_p11 = scmp.ne.s32.totalorder %s31_s18, %s1105_s10  ;;  %p1111_p13 = scmp.lt.s32.totalorder %s1105_s10, %s1105_s10 }
  0x1c   :  { %p1112_p0 = por %p1111_p13, %p1110_p12 }
  0x1e   :  { %p1113_p1 = pnand %p1112_p0, %p1106_p11 }
  0x20   :  { %1116 = shalt.err (!%p1113_p1)
}
  0x21   :  { %33 = dma.hbm_to_vmem [thread:$0]  %s1255_s2, 128, %s31_s18, [#allocation6]  }
  0x22   :  { %1139 = dma.done.wait [#allocation3], 128  }
  0x23   :  { %1140 = vsyncadd [#allocation3], 4294967168 }
  0x24   :  { %1141 = dma.done.wait [#allocation6], 128  }
  0x25   :  { %1142 = vsyncadd [#allocation6], 4294967168  ;;  %v1147_v0 = vmov 0.0   ;;  %vm1148_vm0 = vmmov 0   ;;  %vm46_vm1 = vcmask 64512   ;;  %v45_v1 = vld [vmem:[%s1256_s3] sm:$0xff] }
  0x26   :  { %987 = vmatprep.subr.mxu1 %v1147_v0  ;;  %1017 = vmatprep.subr.mxu0 %v1147_v0  ;;  %v43_v2 = vld [vmem:[#allocation5] sm:$0xff]  ;;  %v44_v3 = vld [vmem:[%s1254_s1] sm:$0xff]  ;;  %v51_v4 = vand.u32 4294901760, %v45_v1  ;;  %s1149_s1 = smov [#allocation7]   ;;  %vm945_vm2 = vcmask 130048  }
  0x27   :  { %989 = vmatprep.mubr.msk.f32.mxu1 %vm1148_vm0, %v1147_v0  ;;  %1019 = vmatprep.mubr.msk.f32.mxu0 %vm1148_vm0, %v1147_v0  ;;  %v500_v5 = vand.u32 4294901760, %v43_v2  ;;  %v48_v6 = vsel %vm46_vm1, %v44_v3, 0  ;;  %v42_v7 = vld [vmem:[#allocation2] sm:$0xff]  ;;  %s953_s3 = sshll.u32 %s1149_s1, 4  ;;  %s954_s3 = int_to_ptr.vmem [resolvable:$true] %s953_s3 }
  0x28   :  { %v116_v8 = vand.u32 4294901760, %v48_v6  ;;  %v497_v9 = vsel %vm46_vm1, %v42_v7, 0  ;;  %988 = vmatpush3.msra.mxu1 %v51_v4  ;;  %v128_v10 = vsub.f32 %v45_v1, %v51_v4  ;;  %s1117_s15 = scalar_lea.vmem %s954_s3, 128  ;;  %p1122_p3 = scmp.lt.s32.totalorder %s954_s3, %s954_s3 }
  0x29   :  { %1018 = vmatpush3.msra.mxu0 %v500_v5  ;;  %v577_v11 = vsub.f32 %v43_v2, %v500_v5  ;;  %v565_v12 = vand.u32 4294901760, %v497_v9  ;;  %992 = vmatprep.subr.mxu1 %v1147_v0  ;;  %p1118_p2 = scmp.ne.s32.totalorder %s954_s3, %s1117_s15  ;;  %p1123_p4 = scmp.lt.s32.totalorder %s1117_s15, %s1117_s15 }
  0x2a   :  { %1022 = vmatprep.subr.mxu0 %v1147_v0  ;;  %v117_v13 = vsub.f32 %v48_v6, %v116_v8  ;;  %v129_v14 = vand.u32 4294901760, %v128_v10 }
  0x2b   :  { %v566_v15 = vsub.f32 %v497_v9, %v565_v12  ;;  %v578_v16 = vand.u32 4294901760, %v577_v11  ;;  %p1124_p5 = por %p1123_p4, %p1122_p3 }
  0x2c   :  { %v118_v17 = vand.u32 4294901760, %v117_v13  ;;  %v130_v18 = vsub.f32 %v128_v10, %v129_v14 }
  0x2d   :  { %v567_v19 = vand.u32 4294901760, %v566_v15  ;;  %v579_v20 = vsub.f32 %v577_v11, %v578_v16  ;;  %p1125_p6 = pnand %p1124_p5, %p1118_p2 }
  0x2e   :  { %v119_v21 = vsub.f32 %v117_v13, %v118_v17  ;;  %v131_v22 = vand.u32 4294901760, %v130_v18 }
  0x2f   :  { %v568_v23 = vsub.f32 %v566_v15, %v567_v19  ;;  %v580_v25 = vand.u32 4294901760, %v579_v20 }
  0x30   :  { %v120_v24 = vand.u32 4294901760, %v119_v21 }
  0x31   :  { %v569_v26 = vand.u32 4294901760, %v568_v23 }
  0x32   :  { %990 = vmatmul.mubr.f32.vlgmr.msra.gmra.mrb[0].mxu1 %v120_v24 }
  0x33   :  { %993 = vmatpush3.msra.mxu1 %v131_v22  ;;  %1020 = vmatmul.mubr.f32.vlgmr.msra.gmra.mrb[0].mxu0 %v569_v26 }
  0x34   :  { %1023 = vmatpush3.msra.mxu0 %v580_v25  ;;  %994 = vmatprep.mubr.msk.f32.mxu1 %vm1148_vm0, %v1147_v0 }
  0x35   :  { %997 = vmatprep.subr.mxu1 %v1147_v0  ;;  %1024 = vmatprep.mubr.msk.f32.mxu0 %vm1148_vm0, %v1147_v0 }
  0x36   :  { %1027 = vmatprep.subr.mxu0 %v1147_v0 }
  0x3a   :  { %995 = vmatmul.mubr.f32.vlgmr.msra.gmra.mrb[0].mxu1 %v116_v8 }
  0x3b   :  { %998 = vmatpush3.msra.mxu1 %v128_v10  ;;  %1025 = vmatmul.mubr.f32.vlgmr.msra.gmra.mrb[0].mxu0 %v565_v12 }
  0x3c   :  { %1028 = vmatpush3.msra.mxu0 %v577_v11  ;;  %999 = vmatprep.mubr.msk.f32.mxu1 %vm1148_vm0, %v1147_v0 }
  0x3d   :  { %1002 = vmatprep.subr.mxu1 %v1147_v0  ;;  %1029 = vmatprep.mubr.msk.f32.mxu0 %vm1148_vm0, %v1147_v0 }
  0x3e   :  { %1032 = vmatprep.subr.mxu0 %v1147_v0 }
  0x42   :  { %1000 = vmatmul.mubr.f32.vlgmr.msra.gmra.mrb[0].mxu1 %v117_v13 }
  0x43   :  { %1003 = vmatpush3.msra.mxu1 %v51_v4  ;;  %1030 = vmatmul.mubr.f32.vlgmr.msra.gmra.mrb[0].mxu0 %v566_v15 }
  0x44   :  { %1033 = vmatpush3.msra.mxu0 %v500_v5  ;;  %1004 = vmatprep.mubr.msk.f32.mxu1 %vm1148_vm0, %v1147_v0 }
  0x45   :  { %1007 = vmatprep.subr.mxu1 %v1147_v0  ;;  %1034 = vmatprep.mubr.msk.f32.mxu0 %vm1148_vm0, %v1147_v0 }
  0x46   :  { %1037 = vmatprep.subr.mxu0 %v1147_v0 }
  0x4a   :  { %1005 = vmatmul.mubr.f32.vlgmr.msra.gmra.mrb[0].mxu1 %v118_v17 }
  0x4b   :  { %1008 = vmatpush3.msra.mxu1 %v129_v14  ;;  %1035 = vmatmul.mubr.f32.vlgmr.msra.gmra.mrb[0].mxu0 %v567_v19 }
  0x4c   :  { %1038 = vmatpush3.msra.mxu0 %v578_v16  ;;  %1009 = vmatprep.mubr.msk.f32.mxu1 %vm1148_vm0, %v1147_v0 }
  0x4d   :  { %1012 = vmatprep.subr.mxu1 %v1147_v0  ;;  %1039 = vmatprep.mubr.msk.f32.mxu0 %vm1148_vm0, %v1147_v0 }
  0x4e   :  { %1042 = vmatprep.subr.mxu0 %v1147_v0 }
  0x52   :  { %1010 = vmatmul.mubr.f32.vlgmr.msra.gmra.mrb[0].mxu1 %v116_v8 }
  0x53   :  { %1013 = vmatpush3.msra.mxu1 %v51_v4  ;;  %1040 = vmatmul.mubr.f32.vlgmr.msra.gmra.mrb[0].mxu0 %v565_v12 }
  0x54   :  { %1043 = vmatpush3.msra.mxu0 %v500_v5  ;;  %1014 = vmatprep.mubr.msk.f32.mxu1 %vm1148_vm0, %v1147_v0 }
  0x55   :  { %1044 = vmatprep.mubr.msk.f32.mxu0 %vm1148_vm0, %v1147_v0 }
  0x5a   :  { %1015 = vmatmul.mubr.f32.vlgmr.msra.gmra.mrb[0].mxu1 %v116_v8 }
  0x5b   :  { %1045 = vmatmul.mubr.f32.vlgmr.msra.gmra.mrb[0].mxu0 %v565_v12 }
 0x12d   :  { %v492_v27 = vpop.f32.mrb[0].mxu1 }
 0x12e   :  { %v941_v28 = vpop.f32.mrb[0].mxu0  ;;  %v1016_v29 = vpop.f32.mrb[1].mxu1 }
 0x12f   :  { %v1047_v30 = vadd.f32 %v941_v28, %v492_v27  ;;  %v1046_v31 = vpop.f32.mrb[1].mxu0 }
 0x131   :  { %946 = vst.msk [vmem:[#allocation7] sm:$0xff] %vm945_vm2, %v1047_v30 }
 0x132   :  { %1128 = shalt.err (!%p1125_p6)
}
 0x133   :  { %s1129_s18 = scalar_lea.hbm %s1257_s4, 128 }
 0x134   :  { %p1130_p7 = scmp.ne.s32.totalorder %s1257_s4, %s1129_s18  ;;  %p1133_p8 = scmp.lt.u32.totalorder %s1129_s18, %s1257_s4 }
 0x136   :  { %p1135_p9 = pnand %p1133_p8, %p1130_p7 }
 0x138   :  { %1138 = shalt.err (!%p1135_p9)
}
 0x139   :  { %956 = dma.vmem_to_hbm [thread:$0]  %s954_s3, 128, %s1257_s4, [#allocation4]  }
 0x13a   :  { %1143 = dma.done.wait [#allocation4], 128  }
 0x13b   :  { %1144 = vsyncadd [#allocation4], 4294967168 }
 0x13c   :  { %960 = vsyncpa [#allocation3], 1 }
 0x13d   :  { %961 = vsyncpa [#allocation6], 1 }
 0x13e   :  { %962 = vsyncpa [#allocation4], 1 }

</bundles_post_ra>
